<compile_context>
chip_gen: v6e
topology: v6e:2x2x1
jax: 0.10.0
libtpu: 0.0.40
codegen_flags: <defaults>
</compile_context>

<pallas_src>
import math

import jax
import jax.numpy as jnp
from jax.experimental import pallas as pl
from jax.experimental.pallas import tpu as pltpu


# ----------------------------- config (small) ------------------------------
B = 2          # batch
S = 8          # sequence length
H = 32         # model.hidden
FF = 4 * H     # feed-forward width
V = 32         # model.vocab_size
N = B * S      # flattened token count
EPS = 1e-5
# NOTE: at this toy size every vector op uses 32/128 lanes and matmuls use
# <=32 MXU columns; when real aaTransformer dims are plugged in, keep H/FF/V
# multiples of 128 (and S a multiple of 8) for unmasked (8,128) tiles, and
# consider bf16 weights/activations with f32 accumulation on v6e/v7x.


def _layernorm(x, gamma, beta):
    mu = jnp.mean(x, axis=-1, keepdims=True)
    xc = x - mu
    var = jnp.mean(xc * xc, axis=-1, keepdims=True)
    return xc * jax.lax.rsqrt(var + EPS) * gamma + beta


def _gelu(x):
    # TODO(synk): PyTorch nn.GELU default is exact erf; tanh approx keeps math
    # on VPU/EUP with a small numerical difference.
    c = math.sqrt(2.0 / math.pi)
    return 0.5 * x * (1.0 + jnp.tanh(c * (x + 0.044715 * x * x * x)))


def mass2protein_kernel(
    tok_ref,                              # (N, 1)  int32 token ids (batch*seq)
    emb_ref,                              # (V, H)  embedding table
    wqkv_ref, bqkv_ref,                   # (H, 3H), (1, 3H); q-slice pre-scaled
    wo_ref, bo_ref,                       # attention output projection
    g1_ref, be1_ref,                      # layernorm 1
    w1_ref, bw1_ref, w2_ref, bw2_ref,     # MLP
    g2_ref, be2_ref,                      # layernorm 2
    wp_ref, bp_ref,                       # mprotein head: Linear(H, V)
    out_ref,                              # (N, V)  logits
):
    # ---- embedding lookup fused as one-hot x table matmul (MXU) ------------
    ids = tok_ref[...]                                                 # (N, 1)
    onehot = (jax.lax.broadcasted_iota(jnp.int32, (N, V), 1) == ids)
    onehot = onehot.astype(jnp.float32)                                # (N, V)
    x = jnp.dot(onehot, emb_ref[...], preferred_element_type=jnp.float32)  # (N, H)

    # ---- fused QKV projection (one MXU pass instead of three) --------------
    qkv = jnp.dot(x, wqkv_ref[...], preferred_element_type=jnp.float32) + bqkv_ref[...]
    q = qkv[:, 0 * H:1 * H].reshape(B, S, H)   # 1/sqrt(H) already folded in
    k = qkv[:, 1 * H:2 * H].reshape(B, S, H)
    v = qkv[:, 2 * H:3 * H].reshape(B, S, H)

    # ---- single-head self-attention (batched; contract on H, no k.T) -------
    s = jnp.einsum("bqh,bkh->bqk", q, k, preferred_element_type=jnp.float32)  # (B,S,S)
    s = s - jnp.max(s, axis=-1, keepdims=True)
    p = jnp.exp(s)
    p = p * pl.reciprocal(jnp.sum(p, axis=-1, keepdims=True), approx=True)
    a = jnp.einsum("bqk,bkh->bqh", p, v, preferred_element_type=jnp.float32)  # (B,S,H)
    a = a.reshape(N, H)
    a = jnp.dot(a, wo_ref[...], preferred_element_type=jnp.float32) + bo_ref[...]

    x = _layernorm(x + a, g1_ref[...], be1_ref[...])                   # (N, H)

    # ---- feed-forward -------------------------------------------------------
    h = jnp.dot(x, w1_ref[...], preferred_element_type=jnp.float32) + bw1_ref[...]
    h = _gelu(h)
    h = jnp.dot(h, w2_ref[...], preferred_element_type=jnp.float32) + bw2_ref[...]

    x = _layernorm(x + h, g2_ref[...], be2_ref[...])                   # (N, H)

    # ---- mprotein head: Linear(hidden, vocab_size) --------------------------
    logits = jnp.dot(x, wp_ref[...], preferred_element_type=jnp.float32) + bp_ref[...]
    # NOTE: V=32 < 128 lanes -> masked stores; negligible at this size, but make
    # V a multiple of 128 (lane-dense vst) when the real vocab size is used.
    out_ref[...] = logits.astype(out_ref.dtype)


_WEIGHT_ORDER = (
    "emb", "wqkv", "bqkv", "wo", "bo",
    "g1", "be1", "w1", "bw1", "w2", "bw2", "g2", "be2",
    "wp", "bp",
)


def mass2protein_forward(tokens, params):
    """tokens: (B, S) int32 token ids -> logits (B, S, V) float32."""
    tok = tokens.reshape(N, 1).astype(jnp.int32)   # free row-major view
    n_in = 1 + len(_WEIGHT_ORDER)
    logits = pl.pallas_call(
        mass2protein_kernel,
        out_shape=jax.ShapeDtypeStruct((N, V), jnp.float32),
        # Single grid step: whole arrays resident in VMEM (<0.5 MiB total on
        # v5e/v6e/v7x), no per-step overhead or weight re-staging.
        in_specs=[pl.BlockSpec(memory_space=pltpu.MemorySpace.VMEM)] * n_in,
        out_specs=pl.BlockSpec(memory_space=pltpu.MemorySpace.VMEM),
    )(tok, *[params[n] for n in _WEIGHT_ORDER])
    return logits.reshape(B, S, V)                 # free row-major view


def init_params(key):
    keys = jax.random.split(key, 8)
    sc = 0.02

    def nrm(k, shape):
        return (sc * jax.random.normal(k, shape)).astype(jnp.float32)

    # Attention scale folded into the q projection once, at init time.
    scale = 1.0 / math.sqrt(H)
    wq, wk, wv = nrm(keys[1], (H, H)), nrm(keys[2], (H, H)), nrm(keys[3], (H, H))
    bq = bk = bv = jnp.zeros((1, H), jnp.float32)

    params = {
        "emb": nrm(keys[0], (V, H)),
        "wqkv": jnp.concatenate([wq * scale, wk, wv], axis=1),   # (H, 3H)
        "bqkv": jnp.concatenate([bq * scale, bk, bv], axis=1),   # (1, 3H)
        "wo": nrm(keys[4], (H, H)), "bo": jnp.zeros((1, H), jnp.float32),
        "g1": jnp.ones((1, H), jnp.float32), "be1": jnp.zeros((1, H), jnp.float32),
        "w1": nrm(keys[5], (H, FF)), "bw1": jnp.zeros((1, FF), jnp.float32),
        "w2": nrm(keys[6], (FF, H)), "bw2": jnp.zeros((1, H), jnp.float32),
        "g2": jnp.ones((1, H), jnp.float32), "be2": jnp.zeros((1, H), jnp.float32),
        # mprotein = nn.Linear(hidden, vocab_size)
        "wp": nrm(keys[7], (H, V)), "bp": jnp.zeros((1, V), jnp.float32),
    }
    return params


if __name__ == "__main__":
    key = jax.random.PRNGKey(0)
    pkey, tkey = jax.random.split(key)
    params = init_params(pkey)
    tokens = jax.random.randint(tkey, (B, S), minval=0, maxval=V, dtype=jnp.int32)

    logits = mass2protein_forward(tokens, params)
    jax.block_until_ready(logits)
    assert logits.shape == (B, S, V), logits.shape
    print("KERNEL_OK")
</pallas_src>

<mosaic_0001>
module attributes {stable_mosaic.version = 11 : i64} {
  func.func @mass2protein_kernel(%arg0: memref<16x1xi32, #tpu.memory_space<vmem>>, %arg1: memref<32x32xf32, #tpu.memory_space<vmem>>, %arg2: memref<32x96xf32, #tpu.memory_space<vmem>>, %arg3: memref<1x96xf32, #tpu.memory_space<vmem>>, %arg4: memref<32x32xf32, #tpu.memory_space<vmem>>, %arg5: memref<1x32xf32, #tpu.memory_space<vmem>>, %arg6: memref<1x32xf32, #tpu.memory_space<vmem>>, %arg7: memref<1x32xf32, #tpu.memory_space<vmem>>, %arg8: memref<32x128xf32, #tpu.memory_space<vmem>>, %arg9: memref<1x128xf32, #tpu.memory_space<vmem>>, %arg10: memref<128x32xf32, #tpu.memory_space<vmem>>, %arg11: memref<1x32xf32, #tpu.memory_space<vmem>>, %arg12: memref<1x32xf32, #tpu.memory_space<vmem>>, %arg13: memref<1x32xf32, #tpu.memory_space<vmem>>, %arg14: memref<32x32xf32, #tpu.memory_space<vmem>>, %arg15: memref<1x32xf32, #tpu.memory_space<vmem>>, %arg16: memref<16x32xf32, #tpu.memory_space<vmem>>) attributes {dimension_semantics = [], scalar_prefetch = 0 : i64, scratch_operands = 0 : i64, tpu.core_type = #tpu.core_type<tc>} {
    %c0 = arith.constant 0 : index
    %c0_0 = arith.constant 0 : index
    %0 = vector.load %arg0[%c0, %c0_0] : memref<16x1xi32, #tpu.memory_space<vmem>>, vector<16x1xi32>
    %1 = tpu.iota {dimensions = array<i32: 1>} : vector<16x32xi32>
    %2 = vector.broadcast %0 : vector<16x1xi32> to vector<16x32xi32>
    %3 = arith.cmpi eq, %1, %2 : vector<16x32xi32>
    %4 = arith.extui %3 : vector<16x32xi1> to vector<16x32xi32>
    %5 = arith.sitofp %4 : vector<16x32xi32> to vector<16x32xf32>
    %c0_1 = arith.constant 0 : index
    %c0_2 = arith.constant 0 : index
    %6 = vector.load %arg1[%c0_1, %c0_2] : memref<32x32xf32, #tpu.memory_space<vmem>>, vector<32x32xf32>
    %cst = arith.constant dense<0.000000e+00> : vector<16x32xf32>
    %7 = tpu.matmul %5, %6, %cst {dimension_numbers = #tpu.dot_dimension_numbers<[1], [0], [0], [1], [0, 0, 1, 1], [], []>} : vector<16x32xf32>, vector<32x32xf32>, vector<16x32xf32> -> vector<16x32xf32>
    %c0_3 = arith.constant 0 : index
    %c0_4 = arith.constant 0 : index
    %8 = vector.load %arg2[%c0_3, %c0_4] : memref<32x96xf32, #tpu.memory_space<vmem>>, vector<32x96xf32>
    %cst_5 = arith.constant dense<0.000000e+00> : vector<16x96xf32>
    %9 = tpu.matmul %7, %8, %cst_5 {dimension_numbers = #tpu.dot_dimension_numbers<[1], [0], [0], [1], [0, 0, 1, 1], [], []>} : vector<16x32xf32>, vector<32x96xf32>, vector<16x96xf32> -> vector<16x96xf32>
    %c0_6 = arith.constant 0 : index
    %c0_7 = arith.constant 0 : index
    %10 = vector.load %arg3[%c0_6, %c0_7] : memref<1x96xf32, #tpu.memory_space<vmem>>, vector<1x96xf32>
    %11 = vector.broadcast %10 : vector<1x96xf32> to vector<16x96xf32>
    %12 = arith.addf %9, %11 : vector<16x96xf32>
    %13 = vector.extract_strided_slice %12 {offsets = [0, 0], sizes = [16, 32], strides = [1, 1]} : vector<16x96xf32> to vector<16x32xf32>
    %14 = vector.shape_cast %13 : vector<16x32xf32> to vector<2x8x32xf32>
    %15 = vector.extract_strided_slice %12 {offsets = [0, 32], sizes = [16, 32], strides = [1, 1]} : vector<16x96xf32> to vector<16x32xf32>
    %16 = vector.shape_cast %15 : vector<16x32xf32> to vector<2x8x32xf32>
    %17 = vector.extract_strided_slice %12 {offsets = [0, 64], sizes = [16, 32], strides = [1, 1]} : vector<16x96xf32> to vector<16x32xf32>
    %18 = vector.shape_cast %17 : vector<16x32xf32> to vector<2x8x32xf32>
    "tpu.trace_start"() <{level = 10 : i32, message = "bqh,bkh->bqk"}> : () -> ()
    %cst_8 = arith.constant dense<0.000000e+00> : vector<2x8x8xf32>
    %19 = tpu.matmul %14, %16, %cst_8 {dimension_numbers = #tpu.dot_dimension_numbers<[2], [2], [1], [1], [0, 0, 0, 1, 1, 1], [0], [0]>} : vector<2x8x32xf32>, vector<2x8x32xf32>, vector<2x8x8xf32> -> vector<2x8x8xf32>
    "tpu.trace_stop"() : () -> ()
    %cst_9 = arith.constant dense<0xFF800000> : vector<2x8xf32>
    %20 = vector.multi_reduction <maximumf>, %19, %cst_9 [2] : vector<2x8x8xf32> to vector<2x8xf32>
    %21 = vector.shape_cast %20 : vector<2x8xf32> to vector<2x8x1xf32>
    %22 = vector.broadcast %21 : vector<2x8x1xf32> to vector<2x8x8xf32>
    %23 = arith.subf %19, %22 : vector<2x8x8xf32>
    %24 = math.exp %23 : vector<2x8x8xf32>
    %cst_10 = arith.constant dense<0.000000e+00> : vector<2x8xf32>
    %25 = vector.multi_reduction <add>, %24, %cst_10 [2] : vector<2x8x8xf32> to vector<2x8xf32>
    %26 = vector.shape_cast %25 : vector<2x8xf32> to vector<2x8x1xf32>
    %27 = tpu.reciprocal %26 {approx = true} : vector<2x8x1xf32> -> vector<2x8x1xf32>
    %28 = vector.broadcast %27 : vector<2x8x1xf32> to vector<2x8x8xf32>
    %29 = arith.mulf %24, %28 : vector<2x8x8xf32>
    "tpu.trace_start"() <{level = 10 : i32, message = "bqk,bkh->bqh"}> : () -> ()
    %cst_11 = arith.constant dense<0.000000e+00> : vector<2x8x32xf32>
    %30 = tpu.matmul %29, %18, %cst_11 {dimension_numbers = #tpu.dot_dimension_numbers<[2], [1], [1], [2], [0, 0, 0, 1, 1, 2], [0], [0]>} : vector<2x8x8xf32>, vector<2x8x32xf32>, vector<2x8x32xf32> -> vector<2x8x32xf32>
    "tpu.trace_stop"() : () -> ()
    %31 = vector.shape_cast %30 : vector<2x8x32xf32> to vector<16x32xf32>
    %c0_12 = arith.constant 0 : index
    %c0_13 = arith.constant 0 : index
    %32 = vector.load %arg4[%c0_12, %c0_13] : memref<32x32xf32, #tpu.memory_space<vmem>>, vector<32x32xf32>
    %cst_14 = arith.constant dense<0.000000e+00> : vector<16x32xf32>
    %33 = tpu.matmul %31, %32, %cst_14 {dimension_numbers = #tpu.dot_dimension_numbers<[1], [0], [0], [1], [0, 0, 1, 1], [], []>} : vector<16x32xf32>, vector<32x32xf32>, vector<16x32xf32> -> vector<16x32xf32>
    %c0_15 = arith.constant 0 : index
    %c0_16 = arith.constant 0 : index
    %34 = vector.load %arg5[%c0_15, %c0_16] : memref<1x32xf32, #tpu.memory_space<vmem>>, vector<1x32xf32>
    %35 = vector.broadcast %34 : vector<1x32xf32> to vector<16x32xf32>
    %36 = arith.addf %33, %35 : vector<16x32xf32>
    %37 = arith.addf %7, %36 : vector<16x32xf32>
    %c0_17 = arith.constant 0 : index
    %c0_18 = arith.constant 0 : index
    %38 = vector.load %arg6[%c0_17, %c0_18] : memref<1x32xf32, #tpu.memory_space<vmem>>, vector<1x32xf32>
    %c0_19 = arith.constant 0 : index
    %c0_20 = arith.constant 0 : index
    %39 = vector.load %arg7[%c0_19, %c0_20] : memref<1x32xf32, #tpu.memory_space<vmem>>, vector<1x32xf32>
    %cst_21 = arith.constant dense<0.000000e+00> : vector<16xf32>
    %40 = vector.multi_reduction <add>, %37, %cst_21 [1] : vector<16x32xf32> to vector<16xf32>
    %41 = vector.shape_cast %40 : vector<16xf32> to vector<16x1xf32>
    %cst_22 = arith.constant 3.200000e+01 : f32
    %42 = vector.broadcast %cst_22 : f32 to vector<16x1xf32>
    %43 = arith.divf %41, %42 : vector<16x1xf32>
    %44 = vector.broadcast %43 : vector<16x1xf32> to vector<16x32xf32>
    %45 = arith.subf %37, %44 : vector<16x32xf32>
    %46 = arith.mulf %45, %45 : vector<16x32xf32>
    %cst_23 = arith.constant dense<0.000000e+00> : vector<16xf32>
    %47 = vector.multi_reduction <add>, %46, %cst_23 [1] : vector<16x32xf32> to vector<16xf32>
    %48 = vector.shape_cast %47 : vector<16xf32> to vector<16x1xf32>
    %cst_24 = arith.constant 3.200000e+01 : f32
    %49 = vector.broadcast %cst_24 : f32 to vector<16x1xf32>
    %50 = arith.divf %48, %49 : vector<16x1xf32>
    %cst_25 = arith.constant 9.99999974E-6 : f32
    %51 = vector.broadcast %cst_25 : f32 to vector<16x1xf32>
    %52 = arith.addf %50, %51 : vector<16x1xf32>
    %53 = math.rsqrt %52 : vector<16x1xf32>
    %54 = vector.broadcast %53 : vector<16x1xf32> to vector<16x32xf32>
    %55 = arith.mulf %45, %54 : vector<16x32xf32>
    %56 = vector.broadcast %38 : vector<1x32xf32> to vector<16x32xf32>
    %57 = arith.mulf %55, %56 : vector<16x32xf32>
    %58 = vector.broadcast %39 : vector<1x32xf32> to vector<16x32xf32>
    %59 = arith.addf %57, %58 : vector<16x32xf32>
    %c0_26 = arith.constant 0 : index
    %c0_27 = arith.constant 0 : index
    %60 = vector.load %arg8[%c0_26, %c0_27] : memref<32x128xf32, #tpu.memory_space<vmem>>, vector<32x128xf32>
    %cst_28 = arith.constant dense<0.000000e+00> : vector<16x128xf32>
    %61 = tpu.matmul %59, %60, %cst_28 {dimension_numbers = #tpu.dot_dimension_numbers<[1], [0], [0], [1], [0, 0, 1, 1], [], []>} : vector<16x32xf32>, vector<32x128xf32>, vector<16x128xf32> -> vector<16x128xf32>
    %c0_29 = arith.constant 0 : index
    %c0_30 = arith.constant 0 : index
    %62 = vector.load %arg9[%c0_29, %c0_30] : memref<1x128xf32, #tpu.memory_space<vmem>>, vector<1x128xf32>
    %63 = vector.broadcast %62 : vector<1x128xf32> to vector<16x128xf32>
    %64 = arith.addf %61, %63 : vector<16x128xf32>
    %cst_31 = arith.constant 5.000000e-01 : f32
    %65 = vector.broadcast %cst_31 : f32 to vector<16x128xf32>
    %66 = arith.mulf %65, %64 : vector<16x128xf32>
    %cst_32 = arith.constant 4.471500e-02 : f32
    %67 = vector.broadcast %cst_32 : f32 to vector<16x128xf32>
    %68 = arith.mulf %67, %64 : vector<16x128xf32>
    %69 = arith.mulf %68, %64 : vector<16x128xf32>
    %70 = arith.mulf %69, %64 : vector<16x128xf32>
    %71 = arith.addf %64, %70 : vector<16x128xf32>
    %cst_33 = arith.constant 0.797884583 : f32
    %72 = vector.broadcast %cst_33 : f32 to vector<16x128xf32>
    %73 = arith.mulf %72, %71 : vector<16x128xf32>
    %74 = math.tanh %73 : vector<16x128xf32>
    %cst_34 = arith.constant 1.000000e+00 : f32
    %75 = vector.broadcast %cst_34 : f32 to vector<16x128xf32>
    %76 = arith.addf %75, %74 : vector<16x128xf32>
    %77 = arith.mulf %66, %76 : vector<16x128xf32>
    %c0_35 = arith.constant 0 : index
    %c0_36 = arith.constant 0 : index
    %78 = vector.load %arg10[%c0_35, %c0_36] : memref<128x32xf32, #tpu.memory_space<vmem>>, vector<128x32xf32>
    %cst_37 = arith.constant dense<0.000000e+00> : vector<16x32xf32>
    %79 = tpu.matmul %77, %78, %cst_37 {dimension_numbers = #tpu.dot_dimension_numbers<[1], [0], [0], [1], [0, 0, 1, 1], [], []>} : vector<16x128xf32>, vector<128x32xf32>, vector<16x32xf32> -> vector<16x32xf32>
    %c0_38 = arith.constant 0 : index
    %c0_39 = arith.constant 0 : index
    %80 = vector.load %arg11[%c0_38, %c0_39] : memref<1x32xf32, #tpu.memory_space<vmem>>, vector<1x32xf32>
    %81 = vector.broadcast %80 : vector<1x32xf32> to vector<16x32xf32>
    %82 = arith.addf %79, %81 : vector<16x32xf32>
    %83 = arith.addf %59, %82 : vector<16x32xf32>
    %c0_40 = arith.constant 0 : index
    %c0_41 = arith.constant 0 : index
    %84 = vector.load %arg12[%c0_40, %c0_41] : memref<1x32xf32, #tpu.memory_space<vmem>>, vector<1x32xf32>
    %c0_42 = arith.constant 0 : index
    %c0_43 = arith.constant 0 : index
    %85 = vector.load %arg13[%c0_42, %c0_43] : memref<1x32xf32, #tpu.memory_space<vmem>>, vector<1x32xf32>
    %cst_44 = arith.constant dense<0.000000e+00> : vector<16xf32>
    %86 = vector.multi_reduction <add>, %83, %cst_44 [1] : vector<16x32xf32> to vector<16xf32>
    %87 = vector.shape_cast %86 : vector<16xf32> to vector<16x1xf32>
    %cst_45 = arith.constant 3.200000e+01 : f32
    %88 = vector.broadcast %cst_45 : f32 to vector<16x1xf32>
    %89 = arith.divf %87, %88 : vector<16x1xf32>
    %90 = vector.broadcast %89 : vector<16x1xf32> to vector<16x32xf32>
    %91 = arith.subf %83, %90 : vector<16x32xf32>
    %92 = arith.mulf %91, %91 : vector<16x32xf32>
    %cst_46 = arith.constant dense<0.000000e+00> : vector<16xf32>
    %93 = vector.multi_reduction <add>, %92, %cst_46 [1] : vector<16x32xf32> to vector<16xf32>
    %94 = vector.shape_cast %93 : vector<16xf32> to vector<16x1xf32>
    %cst_47 = arith.constant 3.200000e+01 : f32
    %95 = vector.broadcast %cst_47 : f32 to vector<16x1xf32>
    %96 = arith.divf %94, %95 : vector<16x1xf32>
    %cst_48 = arith.constant 9.99999974E-6 : f32
    %97 = vector.broadcast %cst_48 : f32 to vector<16x1xf32>
    %98 = arith.addf %96, %97 : vector<16x1xf32>
    %99 = math.rsqrt %98 : vector<16x1xf32>
    %100 = vector.broadcast %99 : vector<16x1xf32> to vector<16x32xf32>
    %101 = arith.mulf %91, %100 : vector<16x32xf32>
    %102 = vector.broadcast %84 : vector<1x32xf32> to vector<16x32xf32>
    %103 = arith.mulf %101, %102 : vector<16x32xf32>
    %104 = vector.broadcast %85 : vector<1x32xf32> to vector<16x32xf32>
    %105 = arith.addf %103, %104 : vector<16x32xf32>
    %c0_49 = arith.constant 0 : index
    %c0_50 = arith.constant 0 : index
    %106 = vector.load %arg14[%c0_49, %c0_50] : memref<32x32xf32, #tpu.memory_space<vmem>>, vector<32x32xf32>
    %cst_51 = arith.constant dense<0.000000e+00> : vector<16x32xf32>
    %107 = tpu.matmul %105, %106, %cst_51 {dimension_numbers = #tpu.dot_dimension_numbers<[1], [0], [0], [1], [0, 0, 1, 1], [], []>} : vector<16x32xf32>, vector<32x32xf32>, vector<16x32xf32> -> vector<16x32xf32>
    %c0_52 = arith.constant 0 : index
    %c0_53 = arith.constant 0 : index
    %108 = vector.load %arg15[%c0_52, %c0_53] : memref<1x32xf32, #tpu.memory_space<vmem>>, vector<1x32xf32>
    %109 = vector.broadcast %108 : vector<1x32xf32> to vector<16x32xf32>
    %110 = arith.addf %107, %109 : vector<16x32xf32>
    %c0_54 = arith.constant 0 : index
    %c0_55 = arith.constant 0 : index
    %111 = vector.load %arg16[%c0_54, %c0_55] : memref<16x32xf32, #tpu.memory_space<vmem>>, vector<16x32xf32>
    tpu.vector_store %arg16[%c0_54, %c0_55], %110 {strides = array<i32>} : memref<16x32xf32, #tpu.memory_space<vmem>>, vector<16x32xf32>,
    return
  }
}

</mosaic_0001>

<bundles_post_ra>
// kernel: tpu_custom_call.1
= control target key start
LH: loop header
LB: loop body
LE: loop exit
PB: predicated region body
PF: predicated region fallthrough
CT: control target
= control target key end

     0   :  { %s1728_s0 = inlined_call_operand.vmem [shape: s32[16,1], index: 0, kind: input, shape index: {}]   ;;  %s1729_s1 = inlined_call_operand.vmem [shape: f32[32,32], index: 1, kind: input, shape index: {}]   ;;  %s1730_s2 = inlined_call_operand.vmem [shape: f32[32,96], index: 2, kind: input, shape index: {}]   ;;  %s1731_s3 = inlined_call_operand.vmem [shape: f32[1,96], index: 3, kind: input, shape index: {}]   ;;  %s1732_s4 = inlined_call_operand.vmem [shape: f32[32,32], index: 4, kind: input, shape index: {}]   ;;  %s1733_s5 = inlined_call_operand.vmem [shape: f32[1,32], index: 5, kind: input, shape index: {}]   ;;  %s1734_s6 = inlined_call_operand.vmem [shape: f32[1,32], index: 6, kind: input, shape index: {}]   ;;  %s1735_s7 = inlined_call_operand.hbm [shape: f32[1,32], index: 7, kind: input, shape index: {}]   ;;  %s1736_s8 = inlined_call_operand.vmem [shape: f32[32,128], index: 8, kind: input, shape index: {}]   ;;  %s1737_s9 = inlined_call_operand.hbm [shape: f32[1,128], index: 9, kind: input, shape index: {}]   ;;  %s1738_s10 = inlined_call_operand.vmem [shape: f32[128,32], index: 10, kind: input, shape index: {}]   ;;  %s1739_s11 = inlined_call_operand.hbm [shape: f32[1,32], index: 11, kind: input, shape index: {}]   ;;  %s1740_s12 = inlined_call_operand.vmem [shape: f32[1,32], index: 12, kind: input, shape index: {}]   ;;  %s1741_s13 = inlined_call_operand.vmem [shape: f32[1,32], index: 13, kind: input, shape index: {}]   ;;  %s1742_s14 = inlined_call_operand.vmem [shape: f32[32,32], index: 14, kind: input, shape index: {}]   ;;  %s1743_s15 = inlined_call_operand.vmem [shape: f32[1,32], index: 15, kind: input, shape index: {}]   ;;  %s1744_s16 = inlined_call_operand.hbm [shape: f32[16,32], index: 16, kind: output, shape index: {}]  }
   0x1   :  { %1746 = sst [smem:[#allocation12_spill]] %s1728_s0 }
   0x2   :  { %21 = vsyncpa [#allocation3], 0 }
   0x3   :  { %22 = vsyncpa [#allocation6], 0 }
   0x4   :  { %23 = vsyncpa [#allocation4], 0  ;;  %s1428_s21 = smov [#allocation5]   ;;  %s1429_s23 = smov [#allocation2]  }
   0x5   :  { %s56_s22 = sshll.u32 %s1428_s21, 4  ;;  %s44_s24 = sshll.u32 %s1429_s23, 4  ;;  %s57_s22 = int_to_ptr.vmem [resolvable:$true] %s56_s22  ;;  %s45_s24 = int_to_ptr.vmem [resolvable:$true] %s44_s24 }
   0x6   :  { %s1350_s25 = scalar_lea.vmem %s57_s22, 16  ;;  %s1354_s26 = scalar_lea.vmem %s57_s22, 32 }
   0x7   :  { %p1351_p0 = scmp.ne.s32.totalorder %s57_s22, %s1350_s25  ;;  %p1355_p1 = scmp.lt.s32.totalorder %s57_s22, %s57_s22 }
   0x8   :  { %p1356_p2 = scmp.lt.s32.totalorder %s1354_s26, %s1350_s25 }
   0xa   :  { %p1357_p3 = por %p1356_p2, %p1355_p1 }
   0xc   :  { %p1358_p4 = pnand %p1357_p3, %p1351_p0 }
   0xe   :  { %1361 = shalt.err (!%p1358_p4)
}
   0xf   :  { %59 = dma.hbm_to_vmem [thread:$0]  %s1737_s9, 16, %s57_s22, [#allocation6]  }
  0x10   :  { %s1370_s29 = scalar_lea.vmem %s45_s24, 16  ;;  %s1374_s30 = scalar_lea.vmem %s45_s24, 32 }
  0x11   :  { %p1371_p5 = scmp.ne.s32.totalorder %s45_s24, %s1370_s29  ;;  %p1375_p6 = scmp.lt.s32.totalorder %s45_s24, %s45_s24 }
  0x12   :  { %p1376_p7 = scmp.lt.s32.totalorder %s1374_s30, %s1370_s29 }
  0x14   :  { %p1377_p8 = por %p1376_p7, %p1375_p6 }
  0x16   :  { %p1378_p9 = pnand %p1377_p8, %p1371_p5 }
  0x18   :  { %1381 = shalt.err (!%p1378_p9)
}
  0x19   :  { %47 = dma.hbm_to_vmem [thread:$0]  %s1735_s7, 16, %s45_s24, [#allocation3]  }
  0x1a   :  { %s1430_s18 = smov [#allocation7]  }
  0x1b   :  { %s68_s19 = sshll.u32 %s1430_s18, 4  ;;  %s69_s19 = int_to_ptr.vmem [resolvable:$true] %s68_s19 }
  0x1c   :  { %s1390_s20 = scalar_lea.vmem %s69_s19, 16  ;;  %s1394_s21 = scalar_lea.vmem %s69_s19, 32 }
  0x1d   :  { %p1391_p10 = scmp.ne.s32.totalorder %s69_s19, %s1390_s20  ;;  %p1395_p11 = scmp.lt.s32.totalorder %s69_s19, %s69_s19 }
  0x1e   :  { %p1396_p12 = scmp.lt.s32.totalorder %s1394_s21, %s1390_s20 }
  0x20   :  { %p1397_p13 = por %p1396_p12, %p1395_p11 }
  0x22   :  { %p1398_p0 = pnand %p1397_p13, %p1391_p10 }
  0x24   :  { %1401 = shalt.err (!%p1398_p0)
}
  0x25   :  { %71 = dma.hbm_to_vmem [thread:$0]  %s1739_s11, 16, %s69_s19, [#allocation6]  }
  0x26   :  { %1422 = dma.done.wait [#allocation3], 16  }
  0x27   :  { %1423 = vsyncadd [#allocation3], 4294967280 }
  0x28   :  { %1424 = dma.done.wait [#allocation6], 32  }
  0x29   :  { %1425 = vsyncadd [#allocation6], 4294967264  ;;  %v1431_v0 = vmov 0   ;;  %v1432_v1 = vmov 0.0   ;;  %s1747_s24 = sld [smem:[#allocation12_spill]]  ;;  %v108_v3 = vld [vmem:[%s1729_s1 + $0x18] sm:$0xff]  ;;  %v91_v9 = vlaneseq }
  0x2a   :  { %1321 = vset.pattern.permute.xlu0 %v1431_v0  ;;  %1232 = vmatprep.subr.mxu0 %v1432_v1  ;;  %v107_v4 = vld [vmem:[%s1729_s1 + $0x10] sm:$0xff]  ;;  %v106_v6 = vld [vmem:[%s1729_s1 + $0x8] sm:$0xff]  ;;  %v105_v7 = vld [vmem:[%s1729_s1] sm:$0xff]  ;;  %vm109_vm0 = vcmask 261120   ;;  %vm1433_vm3 = vmmov 0   ;;  %s1434_s25 = smov 96  }
  0x2b   :  { %1200 = vmatprep.subr.mxu1 %v108_v3  ;;  %v194_v8 = vld [vmem:[%s1730_s2 + $0x18] sm:$0xff]  ;;  %v92_v10 = vand.u32 127, %v91_v9  ;;  %v193_v15 = vld [vmem:[%s1730_s2 + $0x10] sm:$0xff]  ;;  %v192_v16 = vld [vmem:[%s1730_s2 + $0x8] sm:$0xff]  ;;  %1234 = vmatprep.mubr.msk.f32.mxu0 %vm1433_vm3, %v1432_v1  ;;  %vm437_vm4 = vcmask 64512  }
  0x2c   :  { %1201 = vmatpush3.msra.mxu1 %v108_v3  ;;  %v191_v17 = vld [vmem:[%s1730_s2] sm:$0xff]  ;;  %v615_v44 = vld [vmem:[%s1732_s4 + $0x18] sm:$0xff]  ;;  %v614_v50 = vld [vmem:[%s1732_s4 + $0x10] sm:$0xff] }
  0x2d   :  { %1202 = vmatprep.subr.mxu1 %v107_v4  ;;  %v1121_v21 = vld [vmem:[%s1731_s3] ss:$0 sm:$0xff]  ;;  %s1435_s3 = smov 64   ;;  %v613_v53 = vld [vmem:[%s1732_s4 + $0x8] sm:$0xff] }
  0x2e   :  { %1203 = vmatpush3.msra.mxu1 %v107_v4  ;;  %v612_v54 = vld [vmem:[%s1732_s4] sm:$0xff] }
  0x2f   :  { %v89_v2 = vld [vmem:[%s1747_s24] sm:$0xff]  ;;  %v90_v5 = vld [vmem:[%s1747_s24 + $0x8] sm:$0xff]  ;;  %1204 = vmatprep.subr.mxu1 %v106_v6 }
  0x30   :  { %94 = vperm.xlu0 %1321, %v89_v2   ;;  %1205 = vmatpush3.msra.mxu1 %v106_v6  ;;  %v1130_v59 = vld [vmem:[%s1733_s5] ss:$0 sm:$0xff] }
  0x31   :  { %1206 = vmatprep.subr.mxu1 %v105_v7 }
  0x32   :  { %1207 = vmatpush3.msra.mxu1 %v105_v7 }
  0x33   :  { %1211 = vmatprep.subr.mxu1 %v194_v8 }
  0x34   :  { %97 = vperm.xlu0 %1321, %v90_v5  }
  0xab   :  { %v95_v11 = vpop.permute.xlu0 %94 }
  0xac   :  { %vm99_vm1 = vcmp.eq.s32.totalorder %v92_v10, %v95_v11 }
  0xad   :  { %v1117_v12 = vsel %vm99_vm1, 1.0, %v1432_v1 }
  0xae   :  { %1208 = vmatprep.mubr.msk.f32.mxu1 %vm109_vm0, %v1117_v12 }
  0xaf   :  { %v98_v13 = vpop.permute.xlu0 %97 }
  0xb0   :  { %vm100_vm2 = vcmp.eq.s32.totalorder %v92_v10, %v98_v13 }
  0xb1   :  { %v1118_v14 = vsel %vm100_vm2, 1.0, %v1432_v1 }
  0xb2   :  { %1209 = vmatmul.mubr.msk.f32.vlgmr.msra.gmra.mxu1 %vm109_vm0, %v1118_v14  ;;  %v754_v14 = vld [vmem:[%s1736_s8 + $0x18] sm:$0xff] }
  0xb3   :  { %1212 = vmatpush3.msra.mxu1 %v194_v8 }
  0xb4   :  { %1213 = vmatprep.subr.mxu1 %v193_v15 }
  0xb5   :  { %1214 = vmatpush3.msra.mxu1 %v193_v15  ;;  %v753_v15 = vld [vmem:[%s1736_s8 + $0x10] sm:$0xff] }
  0xb6   :  { %1215 = vmatprep.subr.mxu1 %v192_v16 }
  0xb7   :  { %1216 = vmatpush3.msra.mxu1 %v192_v16  ;;  %v752_v16 = vld [vmem:[%s1736_s8 + $0x8] sm:$0xff] }
  0xb8   :  { %1217 = vmatprep.subr.mxu1 %v191_v17 }
  0xb9   :  { %1218 = vmatpush3.msra.mxu1 %v191_v17  ;;  %v751_v17 = vld [vmem:[%s1736_s8] sm:$0xff] }
  0xba   :  { %1222 = vmatprep.subr.mxu1 %v1432_v1 }
 0x172   :  { %v1569_v18 = vpop.f32.mrf.mxu1 }
 0x174   :  { %v1571_v19 = vpop.f32.mrf.mxu1 }
 0x175   :  { %1219 = vmatprep.mubr.msk.f32.mxu1 %vm109_vm0, %v1571_v19 }
 0x176   :  { %1220 = vmatmul.mubr.msk.f32.vlgmr.msra.gmra.mxu1 %vm109_vm0, %v1569_v18 }
 0x177   :  { %1224 = vmatprep.mubr.msk.f32.mxu1 %vm1433_vm3, %v1432_v1 }
 0x236   :  { %v1221_v20 = vpop.f32.mrf.mxu1 }
 0x237   :  { %v280_v24 = vadd.f32 %v1221_v20, %v1121_v21 }
 0x238   :  { %v274_v22 = vpop.f32.mrf.mxu1 }
 0x239   :  { %v275_v23 = vadd.f32 %v1121_v21, %v274_v22 }
 0x23b   :  { %284 = vrot.lane.b32.xlu1 %v275_v23, %s1434_s25 }
 0x23f   :  { %361 = vrot.lane.b32.xlu1 %v280_v24, %s1434_s25 }
 0x2ad   :  { %v285_v25 = vpop.permute.xlu1 %284 }
 0x2ae   :  { %1223 = vmatpush3.xpose.msk.msra.mxu1 %vm109_vm0, %v285_v25  ;;  %v1133_v25 = vld [vmem:[%s1734_s6] ss:$0 sm:$0xff] }
 0x2af   :  { %1227 = vmatprep.subr.mxu1 %v1432_v1 }
 0x2b1   :  { %1225 = vmatmul.mubr.msk.f32.vlgmr.msra.gmra.mxu1 %vm109_vm0, %v275_v23  ;;  %v362_v26 = vpop.permute.xlu1 %361 }
 0x2b2   :  { %1228 = vmatpush3.xpose.msk.msra.mxu1 %vm109_vm0, %v362_v26  ;;  %1229 = vmatprep.mubr.msk.f32.mxu1 %vm1433_vm3, %v1432_v1 }
 0x2b3   :  { %1237 = vmatprep.subr.mxu1 %v1432_v1 }
 0x2b5   :  { %1230 = vmatmul.mubr.msk.f32.vlgmr.msra.gmra.mxu1 %vm109_vm0, %v280_v24 }
 0x2b6   :  { %1239 = vmatprep.mubr.msk.f32.mxu1 %vm1433_vm3, %v1432_v1 }
 0x371   :  { %v356_v27 = vpop.f32.mrf.mxu1 }
 0x372   :  { %v438_v28 = vsel %vm437_vm4, %v356_v27, -inf }
 0x373   :  { %439 = vmax.xlane.f32.xlu0 %v438_v28  ;;  %v1226_v29 = vpop.f32.mrf.mxu1 }
 0x375   :  { %v433_v30 = vpop.f32.mrf.mxu1 }
 0x376   :  { %v441_v31 = vsel %vm437_vm4, %v433_v30, -inf }
 0x377   :  { %442 = vmax.xlane.f32.xlu1 %v441_v31  ;;  %v1231_v32 = vpop.f32.mrf.mxu1 }
 0x388   :  { %460 = vrot.lane.b32.xlu1 %v275_v23, %s1435_s3 }
 0x3fc   :  { %v440_v33 = vpop.xlane.xlu0 %439 }
 0x3fd   :  { %v444_v34 = vsub.f32 %v356_v27, %v440_v33 }
 0x3ff   :  { %v446_v35 = vmul.f32 1.442695, %v444_v34  ;;  %v876_v34 = vld [vmem:[%s1738_s10 + $0x78] sm:$0xff] }
 0x400   :  { %v443_v36 = vpop.xlane.xlu1 %442 }
 0x401   :  { %1322 = vpow2.f32 %v446_v35  ;;  %v445_v37 = vsub.f32 %v433_v30, %v443_v36  ;;  %v1134_v30 = vld [vmem:[#allocation2] ss:$0 sm:$0xff]  ;;  %v875_v35 = vld [vmem:[%s1738_s10 + $0x70] sm:$0xff]  ;;  %v874_v36 = vld [vmem:[%s1738_s10 + $0x68] sm:$0xff] }
 0x403   :  { %v448_v38 = vmul.f32 1.442695, %v445_v37  ;;  %v873_v37 = vld [vmem:[%s1738_s10 + $0x60] sm:$0xff] }
 0x404   :  { %v461_v39 = vpop.permute.xlu1 %460 }
 0x405   :  { %1324 = vpow2.f32 %v448_v38  ;;  %1233 = vmatpush3.msra.mxu0 %v461_v39  ;;  %v872_v38 = vld [vmem:[%s1738_s10 + $0x58] sm:$0xff]  ;;  %v871_v39 = vld [vmem:[%s1738_s10 + $0x50] sm:$0xff] }
 0x406   :  { %1242 = vmatprep.subr.mxu0 %v615_v44 }
 0x40e   :  { %v1323_v40 = vpop.eup %1322 }
 0x40f   :  { %v450_v41 = vsel %vm437_vm4, %v1323_v40, 0.0 }
 0x410   :  { %451 = vadd.xlane.f32.xlu0 %v450_v41  ;;  %v869_v41 = vld [vmem:[%s1738_s10 + $0x40] sm:$0xff] }
 0x412   :  { %v1325_v42 = vpop.eup %1324 }
 0x413   :  { %v453_v43 = vsel %vm437_vm4, %v1325_v42, 0.0 }
 0x414   :  { %454 = vadd.xlane.f32.xlu0 %v453_v43  ;;  %v867_v43 = vld [vmem:[%s1738_s10 + $0x30] sm:$0xff] }
 0x42a   :  { %536 = vrot.lane.b32.xlu0 %v280_v24, %s1435_s3 }
 0x499   :  { %v452_v45 = vpop.xlane.xlu0 %451 }
 0x49a   :  { %1326 = vrcp.f32 %v452_v45  ;;  %v865_v45 = vld [vmem:[%s1738_s10 + $0x20] sm:$0xff] }
 0x49d   :  { %v455_v46 = vpop.xlane.xlu0 %454 }
 0x49e   :  { %1328 = vrcp.f32 %v455_v46  ;;  %v864_v46 = vld [vmem:[%s1738_s10 + $0x18] sm:$0xff] }
 0x4a1   :  { %v537_v47 = vpop.permute.xlu0 %536 }
 0x4a2   :  { %1238 = vmatpush3.msra.mxu1 %v537_v47  ;;  %v863_v47 = vld [vmem:[%s1738_s10 + $0x10] sm:$0xff] }
 0x4a3   :  { %1253 = vmatprep.subr.mxu1 %v754_v14 }
 0x4a7   :  { %v1327_v48 = vpop.eup %1326 }
 0x4a8   :  { %v458_v49 = vmul.f32 %v1327_v48, %v1323_v40  ;;  %v870_v40 = vld [vmem:[%s1738_s10 + $0x48] sm:$0xff] }
 0x4a9   :  { %v862_v48 = vld [vmem:[%s1738_s10 + $0x8] sm:$0xff] }
 0x4aa   :  { %1235 = vmatmul.mubr.msk.f32.vlgmr.msra.gmra.mxu0 %vm437_vm4, %v458_v49  ;;  %v861_v49 = vld [vmem:[%s1738_s10] sm:$0xff] }
 0x4ab   :  { %v1329_v51 = vpop.eup %1328  ;;  %1243 = vmatpush3.msra.mxu0 %v615_v44  ;;  %v866_v44 = vld [vmem:[%s1738_s10 + $0x28] sm:$0xff] }
 0x4ac   :  { %v459_v52 = vmul.f32 %v1329_v51, %v1325_v42  ;;  %1244 = vmatprep.subr.mxu0 %v614_v50  ;;  %v868_v42 = vld [vmem:[%s1738_s10 + $0x38] sm:$0xff] }
 0x4ad   :  { %1245 = vmatpush3.msra.mxu0 %v614_v50  ;;  %v1135_v50 = vld [vmem:[#allocation5] ss:$0 sm:$0xff] }
 0x4ae   :  { %1240 = vmatmul.mubr.msk.f32.vlgmr.msra.gmra.mxu1 %vm437_vm4, %v459_v52  ;;  %1246 = vmatprep.subr.mxu0 %v613_v53 }
 0x4af   :  { %1247 = vmatpush3.msra.mxu0 %v613_v53  ;;  %1254 = vmatpush3.msra.mxu1 %v754_v14 }
 0x4b0   :  { %1248 = vmatprep.subr.mxu0 %v612_v54  ;;  %1255 = vmatprep.subr.mxu1 %v753_v15 }
 0x4b1   :  { %1249 = vmatpush3.msra.mxu0 %v612_v54  ;;  %1256 = vmatpush3.msra.mxu1 %v753_v15 }
 0x4b2   :  { %1257 = vmatprep.subr.mxu1 %v752_v16  ;;  %1264 = vmatprep.subr.mxu0 %v876_v34 }
 0x4b3   :  { %1258 = vmatpush3.msra.mxu1 %v752_v16 }
 0x4b4   :  { %1259 = vmatprep.subr.mxu1 %v751_v17 }
 0x4b5   :  { %1260 = vmatpush3.msra.mxu1 %v751_v17 }
 0x56a   :  { %v532_v55 = vpop.f32.mrf.mxu0 }
 0x56b   :  { %1250 = vmatprep.mubr.msk.f32.mxu0 %vm109_vm0, %v532_v55 }
 0x56c   :  { %v1236_v56 = vpop.f32.mrf.mxu0 }
 0x56e   :  { %v608_v57 = vpop.f32.mrf.mxu1 }
 0x56f   :  { %1251 = vmatmul.mubr.msk.f32.vlgmr.msra.gmra.mxu0 %vm109_vm0, %v608_v57 }
 0x570   :  { %v1241_v58 = vpop.f32.mrf.mxu1  ;;  %1265 = vmatpush3.msra.mxu0 %v876_v34 }
 0x571   :  { %1266 = vmatprep.subr.mxu0 %v875_v35 }
 0x572   :  { %1267 = vmatpush3.msra.mxu0 %v875_v35 }
 0x573   :  { %1268 = vmatprep.subr.mxu0 %v874_v36 }
 0x574   :  { %1269 = vmatpush3.msra.mxu0 %v874_v36 }
 0x575   :  { %1270 = vmatprep.subr.mxu0 %v873_v37 }
 0x576   :  { %1271 = vmatpush3.msra.mxu0 %v873_v37 }
 0x577   :  { %1272 = vmatprep.subr.mxu0 %v872_v38 }
 0x578   :  { %1273 = vmatpush3.msra.mxu0 %v872_v38 }
 0x579   :  { %1274 = vmatprep.subr.mxu0 %v871_v39 }
 0x57a   :  { %1275 = vmatpush3.msra.mxu0 %v871_v39  ;;  %v1139_v39 = vld [vmem:[%s1740_s12] ss:$0 sm:$0xff]  ;;  %s1436_s12 = smov [#allocation8]  }
 0x57b   :  { %1276 = vmatprep.subr.mxu0 %v870_v40  ;;  %s1104_s21 = sshll.u32 %s1436_s12, 4  ;;  %s1105_s21 = int_to_ptr.vmem [resolvable:$true] %s1104_s21 }
 0x57c   :  { %1277 = vmatpush3.msra.mxu0 %v870_v40  ;;  %p1407_p2 = scmp.lt.s32.totalorder %s1105_s21, %s1105_s21 }
 0x57d   :  { %1278 = vmatprep.subr.mxu0 %v869_v41 }
 0x57e   :  { %1279 = vmatpush3.msra.mxu0 %v869_v41 }
 0x57f   :  { %1280 = vmatprep.subr.mxu0 %v868_v42 }
 0x580   :  { %1281 = vmatpush3.msra.mxu0 %v868_v42 }
 0x581   :  { %1282 = vmatprep.subr.mxu0 %v867_v43 }
 0x582   :  { %1283 = vmatpush3.msra.mxu0 %v867_v43 }
 0x583   :  { %1284 = vmatprep.subr.mxu0 %v866_v44 }
 0x584   :  { %1285 = vmatpush3.msra.mxu0 %v866_v44  ;;  %v1140_v44 = vld [vmem:[%s1741_s13] ss:$0 sm:$0xff]  ;;  %s1402_s13 = scalar_lea.vmem %s1105_s21, 256 }
 0x585   :  { %1286 = vmatprep.subr.mxu0 %v865_v45  ;;  %p1403_p1 = scmp.ne.s32.totalorder %s1105_s21, %s1402_s13  ;;  %p1408_p3 = scmp.lt.s32.totalorder %s1402_s13, %s1402_s13 }
 0x586   :  { %1287 = vmatpush3.msra.mxu0 %v865_v45 }
 0x587   :  { %1288 = vmatprep.subr.mxu0 %v864_v46  ;;  %p1409_p4 = por %p1408_p3, %p1407_p2 }
 0x588   :  { %1289 = vmatpush3.msra.mxu0 %v864_v46 }
 0x589   :  { %1290 = vmatprep.subr.mxu0 %v863_v47  ;;  %p1410_p5 = pnand %p1409_p4, %p1403_p1 }
 0x58a   :  { %1291 = vmatpush3.msra.mxu0 %v863_v47 }
 0x58b   :  { %1292 = vmatprep.subr.mxu0 %v862_v48 }
 0x58c   :  { %1293 = vmatpush3.msra.mxu0 %v862_v48  ;;  %v1141_v48 = vld [vmem:[%s1743_s15] ss:$0 sm:$0xff] }
 0x58d   :  { %1294 = vmatprep.subr.mxu0 %v861_v49 }
 0x58e   :  { %1295 = vmatpush3.msra.mxu0 %v861_v49 }
 0x62f   :  { %v1252_v60 = vpop.f32.mrf.mxu0 }
 0x630   :  { %v701_v61 = vadd.f32 %v1252_v60, %v1130_v59 }
 0x631   :  { %v695_v62 = vpop.f32.mrf.mxu0 }
 0x632   :  { %v696_v63 = vadd.f32 %v1130_v59, %v695_v62  ;;  %v705_v0 = vadd.f32 %v1569_v18, %v701_v61 }
 0x634   :  { %v711_v1 = vsel %vm109_vm0, %v705_v0, 0.0  ;;  %v704_v2 = vadd.f32 %v696_v63, %v1571_v19 }
 0x635   :  { %712 = vadd.xlane.f32.xlu0 %v711_v1 }
 0x636   :  { %v708_v3 = vsel %vm109_vm0, %v704_v2, 0.0 }
 0x637   :  { %709 = vadd.xlane.f32.xlu1 %v708_v3 }
 0x6be   :  { %v713_v4 = vpop.xlane.xlu0 %712 }
 0x6bf   :  { %v716_v5 = vmul.f32 0.03125, %v713_v4 }
 0x6c0   :  { %v710_v6 = vpop.xlane.xlu1 %709 }
 0x6c1   :  { %v718_v7 = vsub.f32 %v705_v0, %v716_v5  ;;  %v715_v8 = vmul.f32 0.03125, %v710_v6 }
 0x6c3   :  { %v717_v9 = vsub.f32 %v704_v2, %v715_v8  ;;  %v720_v10 = vmul.f32 %v718_v7, %v718_v7 }
 0x6c5   :  { %v724_v11 = vsel %vm109_vm0, %v720_v10, 0.0  ;;  %v719_v12 = vmul.f32 %v717_v9, %v717_v9 }
 0x6c6   :  { %725 = vadd.xlane.f32.xlu0 %v724_v11 }
 0x6c7   :  { %v721_v13 = vsel %vm109_vm0, %v719_v12, 0.0 }
 0x6c8   :  { %722 = vadd.xlane.f32.xlu1 %v721_v13 }
 0x74f   :  { %v726_v18 = vpop.xlane.xlu0 %725 }
 0x750   :  { %v728_v19 = vmul.f32 0.03125, %v726_v18 }
 0x751   :  { %v723_v20 = vpop.xlane.xlu1 %722 }
 0x752   :  { %v730_v21 = vadd.f32 1e-05, %v728_v19  ;;  %v727_v22 = vmul.f32 0.03125, %v723_v20 }
 0x754   :  { %1330 = vrsqrt.f32 %v730_v21  ;;  %v729_v23 = vadd.f32 1e-05, %v727_v22 }
 0x756   :  { %1332 = vrsqrt.f32 %v729_v23 }
 0x761   :  { %v1331_v24 = vpop.eup %1330 }
 0x762   :  { %v734_v26 = vmul.f32 %v1331_v24, %v718_v7 }
 0x763   :  { %v1333_v27 = vpop.eup %1332 }
 0x764   :  { %v733_v28 = vmul.f32 %v1333_v27, %v717_v9  ;;  %v742_v29 = vmul.f32 %v1133_v25, %v734_v26  ;;  %v1138_v9 = vld [vmem:[#allocation7] ss:$0 sm:$0xff] }
 0x766   :  { %v741_v31 = vmul.f32 %v1133_v25, %v733_v28  ;;  %v1640_v33 = vadd.f32 %v1134_v30, %v742_v29  ;;  %v1008_v28 = vld [vmem:[%s1742_s14 + $0x18] sm:$0xff]  ;;  %v1007_v29 = vld [vmem:[%s1742_s14 + $0x10] sm:$0xff] }
 0x767   :  { %1299 = vmatprep.subr.mxu1 %v1008_v28 }
 0x768   :  { %v1638_v32 = vadd.f32 %v1134_v30, %v741_v31  ;;  %v1006_v30 = vld [vmem:[%s1742_s14 + $0x8] sm:$0xff]  ;;  %v1005_v31 = vld [vmem:[%s1742_s14] sm:$0xff] }
 0x76a   :  { %1261 = vmatprep.mubr.msk.f32.mxu1 %vm109_vm0, %v1638_v32 }
 0x76b   :  { %1262 = vmatmul.mubr.msk.f32.vlgmr.msra.gmra.mxu1 %vm109_vm0, %v1640_v33 }
 0x76c   :  { %1300 = vmatpush3.msra.mxu1 %v1008_v28 }
 0x76d   :  { %1301 = vmatprep.subr.mxu1 %v1007_v29 }
 0x76e   :  { %1302 = vmatpush3.msra.mxu1 %v1007_v29 }
 0x76f   :  { %1303 = vmatprep.subr.mxu1 %v1006_v30 }
 0x770   :  { %1304 = vmatpush3.msra.mxu1 %v1006_v30 }
 0x771   :  { %1305 = vmatprep.subr.mxu1 %v1005_v31 }
 0x772   :  { %1306 = vmatpush3.msra.mxu1 %v1005_v31 }
 0x82b   :  { %v1263_v51 = vpop.f32.mrf.mxu1 }
 0x82c   :  { %v840_v52 = vadd.f32 %v1263_v51, %v1135_v50 }
 0x82d   :  { %v834_v53 = vpop.f32.mrf.mxu1 }
 0x82e   :  { %v846_v54 = vmul.f32 0.044715, %v840_v52  ;;  %v835_v55 = vadd.f32 %v1135_v50, %v834_v53  ;;  %v844_v6 = vmul.f32 0.5, %v840_v52 }
 0x830   :  { %v848_v56 = vmul.f32 %v846_v54, %v840_v52  ;;  %v845_v57 = vmul.f32 0.044715, %v835_v55  ;;  %v843_v4 = vmul.f32 0.5, %v835_v55 }
 0x832   :  { %v850_v58 = vmul.f32 %v848_v56, %v840_v52  ;;  %v847_v59 = vmul.f32 %v845_v57, %v835_v55 }
 0x834   :  { %v852_v60 = vadd.f32 %v850_v58, %v840_v52  ;;  %v849_v61 = vmul.f32 %v847_v59, %v835_v55 }
 0x836   :  { %v851_v62 = vadd.f32 %v849_v61, %v835_v55  ;;  %v854_v63 = vmul.f32 0.7978846, %v852_v60 }
 0x838   :  { %v853_v0 = vmul.f32 0.7978846, %v851_v62  ;;  %1334 = vtanh.f32 %v854_v63 }
 0x83a   :  { %1336 = vtanh.f32 %v853_v0 }
 0x845   :  { %v1335_v1 = vpop.eup %1334 }
 0x846   :  { %v858_v3 = vadd.f32 1.0, %v1335_v1 }
 0x847   :  { %v1337_v2 = vpop.eup %1336 }
 0x848   :  { %v857_v5 = vadd.f32 1.0, %v1337_v2  ;;  %v860_v8 = vmul.f32 %v858_v3, %v844_v6 }
 0x84a   :  { %v859_v7 = vmul.f32 %v857_v5, %v843_v4 }
 0x84c   :  { %1296 = vmatprep.mubr.f32.mxu0 %v859_v7 }
 0x84d   :  { %1297 = vmatmul.mubr.f32.vlgmr.msra.gmra.mxu0 %v860_v8 }
 0x90d   :  { %v1298_v10 = vpop.f32.mrf.mxu0 }
 0x90e   :  { %v956_v11 = vadd.f32 %v1298_v10, %v1138_v9 }
 0x90f   :  { %v950_v12 = vpop.f32.mrf.mxu0 }
 0x910   :  { %v951_v13 = vadd.f32 %v1138_v9, %v950_v12  ;;  %v960_v14 = vadd.f32 %v956_v11, %v1640_v33 }
 0x912   :  { %v966_v15 = vsel %vm109_vm0, %v960_v14, 0.0  ;;  %v959_v16 = vadd.f32 %v951_v13, %v1638_v32 }
 0x913   :  { %967 = vadd.xlane.f32.xlu0 %v966_v15 }
 0x914   :  { %v963_v17 = vsel %vm109_vm0, %v959_v16, 0.0 }
 0x915   :  { %964 = vadd.xlane.f32.xlu1 %v963_v17 }
 0x99c   :  { %v968_v18 = vpop.xlane.xlu0 %967 }
 0x99d   :  { %v970_v19 = vmul.f32 0.03125, %v968_v18 }
 0x99e   :  { %v965_v20 = vpop.xlane.xlu1 %964 }
 0x99f   :  { %v972_v21 = vsub.f32 %v960_v14, %v970_v19  ;;  %v969_v22 = vmul.f32 0.03125, %v965_v20 }
 0x9a1   :  { %v971_v23 = vsub.f32 %v959_v16, %v969_v22  ;;  %v974_v24 = vmul.f32 %v972_v21, %v972_v21 }
 0x9a3   :  { %v978_v25 = vsel %vm109_vm0, %v974_v24, 0.0  ;;  %v973_v26 = vmul.f32 %v971_v23, %v971_v23 }
 0x9a4   :  { %979 = vadd.xlane.f32.xlu0 %v978_v25 }
 0x9a5   :  { %v975_v27 = vsel %vm109_vm0, %v973_v26, 0.0 }
 0x9a6   :  { %976 = vadd.xlane.f32.xlu1 %v975_v27 }
 0xa2d   :  { %v980_v32 = vpop.xlane.xlu0 %979 }
 0xa2e   :  { %v982_v33 = vmul.f32 0.03125, %v980_v32 }
 0xa2f   :  { %v977_v34 = vpop.xlane.xlu1 %976 }
 0xa30   :  { %v984_v35 = vadd.f32 1e-05, %v982_v33  ;;  %v981_v36 = vmul.f32 0.03125, %v977_v34 }
 0xa32   :  { %1338 = vrsqrt.f32 %v984_v35  ;;  %v983_v37 = vadd.f32 1e-05, %v981_v36 }
 0xa34   :  { %1340 = vrsqrt.f32 %v983_v37 }
 0xa3f   :  { %v1339_v38 = vpop.eup %1338 }
 0xa40   :  { %v988_v40 = vmul.f32 %v1339_v38, %v972_v21 }
 0xa41   :  { %v1341_v41 = vpop.eup %1340 }
 0xa42   :  { %v987_v42 = vmul.f32 %v1341_v41, %v971_v23  ;;  %v996_v43 = vmul.f32 %v1139_v39, %v988_v40 }
 0xa44   :  { %v995_v45 = vmul.f32 %v1139_v39, %v987_v42  ;;  %v1004_v47 = vadd.f32 %v1140_v44, %v996_v43 }
 0xa46   :  { %v1003_v46 = vadd.f32 %v1140_v44, %v995_v45 }
 0xa48   :  { %1307 = vmatprep.mubr.msk.f32.mxu1 %vm109_vm0, %v1003_v46 }
 0xa49   :  { %1308 = vmatmul.mubr.msk.f32.vlgmr.msra.gmra.mxu1 %vm109_vm0, %v1004_v47 }
 0xb09   :  { %v1309_v49 = vpop.f32.mrf.mxu1 }
 0xb0a   :  { %v1094_v50 = vadd.f32 %v1309_v49, %v1141_v48 }
 0xb0b   :  { %v1088_v51 = vpop.f32.mrf.mxu1 }
 0xb0c   :  { %1098 = vst.msk [vmem:[#allocation8 + $0x8] sm:$0xff] %vm109_vm0, %v1094_v50  ;;  %v1089_v52 = vadd.f32 %v1141_v48, %v1088_v51 }
 0xb0e   :  { %1097 = vst.msk [vmem:[#allocation8] sm:$0xff] %vm109_vm0, %v1089_v52 }
 0xb0f   :  { %1413 = shalt.err (!%p1410_p5)
}
 0xb10   :  { %s1437_s9 = smov 128   ;;  %s1438_s15 = smov 8  }
 0xb11   :  { %1110 = dma.vmem_to_hbm [thread:$0]  %s1105_s21, 256, %s1744_s16, [#allocation4], %s1437_s9, %s1437_s9, %s1438_s15  }
 0xb12   :  { %1426 = dma.done.wait [#allocation4], 256  }
 0xb13   :  { %1427 = vsyncadd [#allocation4], 4294967040 }
 0xb14   :  { %1114 = vsyncpa [#allocation3], 1 }
 0xb15   :  { %1115 = vsyncpa [#allocation6], 1 }
 0xb16   :  { %1116 = vsyncpa [#allocation4], 1 }

</bundles_post_ra>
